<compile_context>
chip_gen: v6e
topology: v6e:2x2x1
jax: 0.10.0
libtpu: 0.0.40
codegen_flags: <defaults>
</compile_context>

<pallas_src>
import numpy as np
import jax
import jax.numpy as jnp
from jax.experimental import pallas as pl
from jax.experimental.pallas import tpu as pltpu

# ----- synthetic config (small shapes consistent with the module) -----
B = 2           # batch (entity pairs)
T = 8           # text_length
D = 32          # encoder hidden size
DIM = 16        # config['dim']
NUM_REL = 4     # len(relation_map)
R1 = NUM_REL + 1
MULTI_LABEL = True
EPS = 1e-12     # norm clamp (matches F.normalize-style behavior; avoids 0/0)


def concat_nonlinear_kernel(h_ref, ind_ref, w1a_ref, w1b_ref, b1_ref, rel_ref,
                            scores_ref, xn_ref):
    """One batch tile: masked entity max-pool -> split Linear + ReLU ->
    L2 row-normalize (rsqrt) -> scores vs. pre-normalized relation matrix."""
    h = h_ref[...]                                   # [BT, T, D]
    ind = ind_ref[...]                               # [BT, T, 2]
    e1 = ind[:, :, 0:1]                              # [BT, T, 1]
    e2 = ind[:, :, 1:2]                              # [BT, T, 1]

    # masked max-pool over the sequence for both entity spans
    e1_vec = jnp.max(jnp.where(e1 > 0.5, h, -1000.0), axis=1)   # [BT, D]
    e2_vec = jnp.max(jnp.where(e2 > 0.5, h, -1000.0), axis=1)   # [BT, D]

    # layer1(cat(e1_vec, e2_vec)) expressed as two dots (no lane concat)
    x = (jnp.dot(e1_vec, w1a_ref[...], preferred_element_type=jnp.float32)
         + jnp.dot(e2_vec, w1b_ref[...], preferred_element_type=jnp.float32)
         + b1_ref[...])                                          # [BT, DIM]
    x = jnp.maximum(x, 0.0)                                      # ReLU (dropout=id)

    # L2-normalize rows with rsqrt-multiply
    inv = jax.lax.rsqrt(jnp.sum(x * x, axis=1, keepdims=True) + EPS)
    xn = x * inv                                                 # [BT, DIM]

    xn_ref[...] = xn
    # relation matrix is pre-column-normalized (and pre-sliced for multi_label)
    scores_ref[...] = jnp.dot(xn, rel_ref[...],
                              preferred_element_type=jnp.float32)


def prepare_kernel_params(params, multi_label=MULTI_LABEL):
    """One-time parameter prep (outside the hot path):
    split layer1 weight into halves, column-normalize relation matrix,
    drop the last relation column if multi_label."""
    w1, b1, rel = params
    d = w1.shape[0] // 2
    rel_n = rel / jnp.sqrt(jnp.sum(rel * rel, axis=0, keepdims=True))
    if multi_label:
        rel_n = rel_n[:, :-1]
    return w1[:d], w1[d:], b1, rel_n


def concat_nonlinear_forward(h, e1_indicator, e2_indicator, kparams, b_tile=None):
    """Pallas wrapper mirroring ConcatNonLinearNormalized.forward (post-encoder)."""
    w1a, w1b, b1, rel_n = kparams
    batch, t, d = h.shape
    dim = w1a.shape[1]
    n_rel = rel_n.shape[1]

    if b_tile is None:
        b_tile = 128 if batch >= 128 else max(8, ((batch + 7) // 8) * 8)
    padded = ((batch + b_tile - 1) // b_tile) * b_tile

    ind = jnp.stack([e1_indicator, e2_indicator], axis=-1)       # [B, T, 2]
    if padded != batch:
        h = jnp.pad(h, ((0, padded - batch), (0, 0), (0, 0)))
        ind = jnp.pad(ind, ((0, padded - batch), (0, 0), (0, 0)))

    grid = (padded // b_tile,)
    scores, xn = pl.pallas_call(
        concat_nonlinear_kernel,
        out_shape=(jax.ShapeDtypeStruct((padded, n_rel), jnp.float32),
                   jax.ShapeDtypeStruct((padded, dim), jnp.float32)),
        grid_spec=pltpu.PrefetchScalarGridSpec(
            num_scalar_prefetch=0,
            grid=grid,
            in_specs=[
                pl.BlockSpec((b_tile, t, d), lambda i: (i, 0, 0)),   # h
                pl.BlockSpec((b_tile, t, 2), lambda i: (i, 0, 0)),   # indicators
                pl.BlockSpec((d, dim), lambda i: (0, 0)),            # w1[:D]
                pl.BlockSpec((d, dim), lambda i: (0, 0)),            # w1[D:]
                pl.BlockSpec((1, dim), lambda i: (0, 0)),            # b1
                pl.BlockSpec((dim, n_rel), lambda i: (0, 0)),        # rel (pre-norm)
            ],
            out_specs=(
                pl.BlockSpec((b_tile, n_rel), lambda i: (i, 0)),     # scores
                pl.BlockSpec((b_tile, dim), lambda i: (i, 0)),       # xn
            ),
        ),
        compiler_params=pltpu.CompilerParams(
            dimension_semantics=("parallel",)),
    )(h, ind, w1a, w1b, b1, rel_n)

    if padded != batch:
        scores = scores[:batch]
        xn = xn[:batch]
    return scores, xn


def reference_forward(h, e1_indicator, e2_indicator, params):
    """Pure-JAX reference mirroring the PyTorch code path exactly."""
    w1, b1, rel_mat = params
    e1_mask = 1000.0 * (1.0 - e1_indicator)
    e2_mask = 1000.0 * (1.0 - e2_indicator)
    e1_vec = jnp.max(h * e1_indicator[:, :, None] - e1_mask[:, :, None], axis=1)
    e2_vec = jnp.max(h * e2_indicator[:, :, None] - e2_mask[:, :, None], axis=1)
    x = jnp.maximum(jnp.concatenate([e1_vec, e2_vec], axis=1) @ w1 + b1[0], 0.0)
    xn = x / jnp.sqrt(jnp.sum(x * x, axis=1, keepdims=True))
    rel_n = rel_mat / jnp.sqrt(jnp.sum(rel_mat * rel_mat, axis=0, keepdims=True))
    scores = xn @ rel_n
    if MULTI_LABEL:
        scores = scores[:, :-1]
    return scores, xn


def make_params(key):
    """layer1: Linear(2D, DIM) stored as [2D, DIM] (y = x @ W + b); relation_mat
    initialized and column-normalized as in the module's __init__."""
    k_w, k_b, k_r = jax.random.split(key, 3)
    bound = 1.0 / np.sqrt(2 * D)
    w1 = jax.random.uniform(k_w, (2 * D, DIM), jnp.float32, -bound, bound)
    b1 = jax.random.uniform(k_b, (1, DIM), jnp.float32, -bound, bound)
    rel = (jax.random.uniform(k_r, (DIM, R1), jnp.float32) * 2.0 - 1.0) / np.sqrt(DIM)
    rel = rel / jnp.sqrt(jnp.sum(rel * rel, axis=0, keepdims=True))
    return w1, b1, rel


if __name__ == "__main__":
    key = jax.random.PRNGKey(0)
    k_h, k_e1, k_e2, k_p = jax.random.split(key, 4)

    h = jax.random.normal(k_h, (B, T, D), dtype=jnp.float32)
    e1_indicator = (jax.random.uniform(k_e1, (B, T)) > 0.7).astype(jnp.float32)
    e1_indicator = e1_indicator.at[:, 0].set(1.0)       # at least one entity-1 token
    e2_indicator = (jax.random.uniform(k_e2, (B, T)) > 0.7).astype(jnp.float32)
    e2_indicator = e2_indicator.at[:, T - 1].set(1.0)   # at least one entity-2 token

    params = make_params(k_p)
    kparams = prepare_kernel_params(params)             # one-time prep (split W, pre-norm rel)

    scores, e1e2_norm = concat_nonlinear_forward(h, e1_indicator, e2_indicator, kparams)
    scores = jax.block_until_ready(scores)
    e1e2_norm = jax.block_until_ready(e1e2_norm)

    ref_scores, ref_vec = reference_forward(h, e1_indicator, e2_indicator, params)
    np.testing.assert_allclose(np.asarray(scores), np.asarray(ref_scores),
                               rtol=1e-5, atol=1e-5)
    np.testing.assert_allclose(np.asarray(e1e2_norm), np.asarray(ref_vec),
                               rtol=1e-5, atol=1e-5)

    print("KERNEL_OK")
</pallas_src>

<mosaic_0001>
module attributes {stable_mosaic.version = 11 : i64} {
  func.func @concat_nonlinear_kernel(%arg0: i32, %arg1: memref<8x8x32xf32, #tpu.memory_space<vmem>>, %arg2: memref<8x8x2xf32, #tpu.memory_space<vmem>>, %arg3: memref<32x16xf32, #tpu.memory_space<vmem>>, %arg4: memref<32x16xf32, #tpu.memory_space<vmem>>, %arg5: memref<1x16xf32, #tpu.memory_space<vmem>>, %arg6: memref<16x4xf32, #tpu.memory_space<vmem>>, %arg7: memref<8x4xf32, #tpu.memory_space<vmem>>, %arg8: memref<8x16xf32, #tpu.memory_space<vmem>>) attributes {dimension_semantics = [#tpu.dimension_semantics<parallel>], iteration_bounds = array<i64: 1>, scalar_prefetch = 0 : i64, scratch_operands = 0 : i64, tpu.core_type = #tpu.core_type<tc>, window_params = [{transform_indices = @transform_0, window_bounds = array<i64: 8, 8, 32>}, {transform_indices = @transform_1, window_bounds = array<i64: 8, 8, 2>}, {pipeline_mode = #tpu.pipeline_mode<synchronous>, transform_indices = @transform_2, window_bounds = array<i64: 32, 16>}, {pipeline_mode = #tpu.pipeline_mode<synchronous>, transform_indices = @transform_3, window_bounds = array<i64: 32, 16>}, {pipeline_mode = #tpu.pipeline_mode<synchronous>, transform_indices = @transform_4, window_bounds = array<i64: 1, 16>}, {pipeline_mode = #tpu.pipeline_mode<synchronous>, transform_indices = @transform_5, window_bounds = array<i64: 16, 4>}, {transform_indices = @transform_6, window_bounds = array<i64: 8, 4>}, {transform_indices = @transform_7, window_bounds = array<i64: 8, 16>}]} {
    %c0 = arith.constant 0 : index
    %c0_0 = arith.constant 0 : index
    %c0_1 = arith.constant 0 : index
    %0 = vector.load %arg1[%c0, %c0_0, %c0_1] : memref<8x8x32xf32, #tpu.memory_space<vmem>>, vector<8x8x32xf32>
    %c0_2 = arith.constant 0 : index
    %c0_3 = arith.constant 0 : index
    %c0_4 = arith.constant 0 : index
    %1 = vector.load %arg2[%c0_2, %c0_3, %c0_4] : memref<8x8x2xf32, #tpu.memory_space<vmem>>, vector<8x8x2xf32>
    %2 = vector.extract_strided_slice %1 {offsets = [0, 0, 0], sizes = [8, 8, 1], strides = [1, 1, 1]} : vector<8x8x2xf32> to vector<8x8x1xf32>
    %3 = vector.extract_strided_slice %1 {offsets = [0, 0, 1], sizes = [8, 8, 1], strides = [1, 1, 1]} : vector<8x8x2xf32> to vector<8x8x1xf32>
    %cst = arith.constant 5.000000e-01 : f32
    %4 = vector.broadcast %cst : f32 to vector<8x8x1xf32>
    %5 = arith.cmpf ogt, %2, %4 : vector<8x8x1xf32>
    %cst_5 = arith.constant -1.000000e+03 : f32
    %6 = vector.shape_cast %5 : vector<8x8x1xi1> to vector<8x8x1xi1>
    %7 = vector.broadcast %6 : vector<8x8x1xi1> to vector<8x8x32xi1>
    %8 = vector.broadcast %cst_5 : f32 to vector<8x8x32xf32>
    %9 = arith.select %7, %0, %8 : vector<8x8x32xi1>, vector<8x8x32xf32>
    %cst_6 = arith.constant dense<0xFF800000> : vector<8x32xf32>
    %10 = vector.multi_reduction <maximumf>, %9, %cst_6 [1] : vector<8x8x32xf32> to vector<8x32xf32>
    %cst_7 = arith.constant 5.000000e-01 : f32
    %11 = vector.broadcast %cst_7 : f32 to vector<8x8x1xf32>
    %12 = arith.cmpf ogt, %3, %11 : vector<8x8x1xf32>
    %cst_8 = arith.constant -1.000000e+03 : f32
    %13 = vector.shape_cast %12 : vector<8x8x1xi1> to vector<8x8x1xi1>
    %14 = vector.broadcast %13 : vector<8x8x1xi1> to vector<8x8x32xi1>
    %15 = vector.broadcast %cst_8 : f32 to vector<8x8x32xf32>
    %16 = arith.select %14, %0, %15 : vector<8x8x32xi1>, vector<8x8x32xf32>
    %cst_9 = arith.constant dense<0xFF800000> : vector<8x32xf32>
    %17 = vector.multi_reduction <maximumf>, %16, %cst_9 [1] : vector<8x8x32xf32> to vector<8x32xf32>
    %c0_10 = arith.constant 0 : index
    %c0_11 = arith.constant 0 : index
    %18 = vector.load %arg3[%c0_10, %c0_11] : memref<32x16xf32, #tpu.memory_space<vmem>>, vector<32x16xf32>
    %cst_12 = arith.constant dense<0.000000e+00> : vector<8x16xf32>
    %19 = tpu.matmul %10, %18, %cst_12 {dimension_numbers = #tpu.dot_dimension_numbers<[1], [0], [0], [1], [0, 0, 1, 1], [], []>} : vector<8x32xf32>, vector<32x16xf32>, vector<8x16xf32> -> vector<8x16xf32>
    %c0_13 = arith.constant 0 : index
    %c0_14 = arith.constant 0 : index
    %20 = vector.load %arg4[%c0_13, %c0_14] : memref<32x16xf32, #tpu.memory_space<vmem>>, vector<32x16xf32>
    %cst_15 = arith.constant dense<0.000000e+00> : vector<8x16xf32>
    %21 = tpu.matmul %17, %20, %cst_15 {dimension_numbers = #tpu.dot_dimension_numbers<[1], [0], [0], [1], [0, 0, 1, 1], [], []>} : vector<8x32xf32>, vector<32x16xf32>, vector<8x16xf32> -> vector<8x16xf32>
    %22 = arith.addf %19, %21 : vector<8x16xf32>
    %c0_16 = arith.constant 0 : index
    %c0_17 = arith.constant 0 : index
    %23 = vector.load %arg5[%c0_16, %c0_17] : memref<1x16xf32, #tpu.memory_space<vmem>>, vector<1x16xf32>
    %24 = vector.broadcast %23 : vector<1x16xf32> to vector<8x16xf32>
    %25 = arith.addf %22, %24 : vector<8x16xf32>
    %cst_18 = arith.constant 0.000000e+00 : f32
    %26 = vector.broadcast %cst_18 : f32 to vector<8x16xf32>
    %27 = arith.maximumf %25, %26 : vector<8x16xf32>
    %28 = arith.mulf %27, %27 : vector<8x16xf32>
    %cst_19 = arith.constant dense<0.000000e+00> : vector<8xf32>
    %29 = vector.multi_reduction <add>, %28, %cst_19 [1] : vector<8x16xf32> to vector<8xf32>
    %30 = vector.shape_cast %29 : vector<8xf32> to vector<8x1xf32>
    %cst_20 = arith.constant 9.99999996E-13 : f32
    %31 = vector.broadcast %cst_20 : f32 to vector<8x1xf32>
    %32 = arith.addf %30, %31 : vector<8x1xf32>
    %33 = math.rsqrt %32 : vector<8x1xf32>
    %34 = vector.broadcast %33 : vector<8x1xf32> to vector<8x16xf32>
    %35 = arith.mulf %27, %34 : vector<8x16xf32>
    %c0_21 = arith.constant 0 : index
    %c0_22 = arith.constant 0 : index
    %36 = vector.load %arg8[%c0_21, %c0_22] : memref<8x16xf32, #tpu.memory_space<vmem>>, vector<8x16xf32>
    tpu.vector_store %arg8[%c0_21, %c0_22], %35 {strides = array<i32>} : memref<8x16xf32, #tpu.memory_space<vmem>>, vector<8x16xf32>,
    %c0_23 = arith.constant 0 : index
    %c0_24 = arith.constant 0 : index
    %37 = vector.load %arg6[%c0_23, %c0_24] : memref<16x4xf32, #tpu.memory_space<vmem>>, vector<16x4xf32>
    %cst_25 = arith.constant dense<0.000000e+00> : vector<8x4xf32>
    %38 = tpu.matmul %35, %37, %cst_25 {dimension_numbers = #tpu.dot_dimension_numbers<[1], [0], [0], [1], [0, 0, 1, 1], [], []>} : vector<8x16xf32>, vector<16x4xf32>, vector<8x4xf32> -> vector<8x4xf32>
    %c0_26 = arith.constant 0 : index
    %c0_27 = arith.constant 0 : index
    %39 = vector.load %arg7[%c0_26, %c0_27] : memref<8x4xf32, #tpu.memory_space<vmem>>, vector<8x4xf32>
    tpu.vector_store %arg7[%c0_26, %c0_27], %38 {strides = array<i32>} : memref<8x4xf32, #tpu.memory_space<vmem>>, vector<8x4xf32>,
    return
  }
  func.func @transform_0(%arg0: i32) -> (i32, i32, i32) {
    %c0_i32 = arith.constant 0 : i32
    %c0_i32_0 = arith.constant 0 : i32
    %c0_i32_1 = arith.constant 0 : i32
    return %arg0, %c0_i32, %c0_i32_0 : i32, i32, i32
  }
  func.func @transform_1(%arg0: i32) -> (i32, i32, i32) {
    %c0_i32 = arith.constant 0 : i32
    %c0_i32_0 = arith.constant 0 : i32
    %c0_i32_1 = arith.constant 0 : i32
    return %arg0, %c0_i32, %c0_i32_0 : i32, i32, i32
  }
  func.func @transform_2(%arg0: i32) -> (i32, i32) {
    %c0_i32 = arith.constant 0 : i32
    %c0_i32_0 = arith.constant 0 : i32
    %c0_i32_1 = arith.constant 0 : i32
    return %c0_i32, %c0_i32_0 : i32, i32
  }
  func.func @transform_3(%arg0: i32) -> (i32, i32) {
    %c0_i32 = arith.constant 0 : i32
    %c0_i32_0 = arith.constant 0 : i32
    %c0_i32_1 = arith.constant 0 : i32
    return %c0_i32, %c0_i32_0 : i32, i32
  }
  func.func @transform_4(%arg0: i32) -> (i32, i32) {
    %c0_i32 = arith.constant 0 : i32
    %c0_i32_0 = arith.constant 0 : i32
    %c0_i32_1 = arith.constant 0 : i32
    return %c0_i32, %c0_i32_0 : i32, i32
  }
  func.func @transform_5(%arg0: i32) -> (i32, i32) {
    %c0_i32 = arith.constant 0 : i32
    %c0_i32_0 = arith.constant 0 : i32
    %c0_i32_1 = arith.constant 0 : i32
    return %c0_i32, %c0_i32_0 : i32, i32
  }
  func.func @transform_6(%arg0: i32) -> (i32, i32) {
    %c0_i32 = arith.constant 0 : i32
    %c0_i32_0 = arith.constant 0 : i32
    return %arg0, %c0_i32 : i32, i32
  }
  func.func @transform_7(%arg0: i32) -> (i32, i32) {
    %c0_i32 = arith.constant 0 : i32
    %c0_i32_0 = arith.constant 0 : i32
    return %arg0, %c0_i32 : i32, i32
  }
}

</mosaic_0001>

<bundles_post_ra>
// kernel: tpu_custom_call.1
= control target key start
LH: loop header
LB: loop body
LE: loop exit
PB: predicated region body
PF: predicated region fallthrough
CT: control target
= control target key end

     0   :  { %v631_v2 = vmov 1   ;;  %v632_v3 = vmov 0   ;;  %s817_s0 = inlined_call_operand.vmem [shape: f32[8,8,32], index: 0, kind: input, shape index: {}]   ;;  %s818_s1 = inlined_call_operand.vmem [shape: f32[8,8,2], index: 1, kind: input, shape index: {}]   ;;  %s819_s2 = inlined_call_operand.vmem [shape: f32[32,16], index: 2, kind: input, shape index: {}]   ;;  %s820_s3 = inlined_call_operand.vmem [shape: f32[32,16], index: 3, kind: input, shape index: {}]   ;;  %s821_s4 = inlined_call_operand.vmem [shape: f32[1,16], index: 4, kind: input, shape index: {}]   ;;  %s822_s5 = inlined_call_operand.vmem [shape: f32[16,4], index: 5, kind: input, shape index: {}]   ;;  %s823_s6 = inlined_call_operand.vmem [shape: f32[8,4], index: 6, kind: output, shape index: {0}]   ;;  %s824_s7 = inlined_call_operand.hbm [shape: f32[8,16], index: 7, kind: output, shape index: {1}]  }
   0x1   :  { %v34_v0 = vld [vmem:[%s818_s1] sm:$0xff]  ;;  %v35_v1 = vld [vmem:[%s818_s1 + $0x8] sm:$0xff]  ;;  %605 = vset.pattern.permute.xlu1 %v631_v2  ;;  %604 = vset.pattern.permute.xlu0 %v632_v3  ;;  %v36_v5 = vld [vmem:[%s818_s1 + $0x10] sm:$0xff] }
   0x2   :  { %vm42_vm0 = vcmp.gt.f32.partialorder %v34_v0, 0.5  ;;  %vm43_vm1 = vcmp.gt.f32.partialorder %v35_v1, 0.5 }
   0x3   :  { %v50_v4 = vsel %vm42_vm0, 1, %v632_v3  ;;  %v51_v6 = vsel %vm43_vm1, 1, %v632_v3 }
   0x4   :  { %156 = vperm.xlu1 %605, %v50_v4   ;;  %59 = vperm.xlu0 %604, %v50_v4  }
   0x5   :  { %13 = vsyncpa [#allocation3], 0  ;;  %vm44_vm2 = vcmp.gt.f32.partialorder %v36_v5, 0.5  ;;  %v37_v7 = vld [vmem:[%s818_s1 + $0x18] sm:$0xff]  ;;  %v38_v9 = vld [vmem:[%s818_s1 + $0x20] sm:$0xff]  ;;  %v633_v18 = vmov 0.0  }
   0x6   :  { %v52_v8 = vsel %vm44_vm2, 1, %v632_v3  ;;  %vm45_vm3 = vcmp.gt.f32.partialorder %v37_v7, 0.5  ;;  %vm46_vm4 = vcmp.gt.f32.partialorder %v38_v9, 0.5  ;;  %v39_v11 = vld [vmem:[%s818_s1 + $0x28] sm:$0xff]  ;;  %v40_v13 = vld [vmem:[%s818_s1 + $0x30] sm:$0xff]  ;;  %v41_v15 = vld [vmem:[%s818_s1 + $0x38] sm:$0xff]  ;;  %570 = vmatprep.subr.mxu0 %v633_v18  ;;  %581 = vmatprep.subr.mxu1 %v633_v18 }
   0x7   :  { %v53_v10 = vsel %vm45_vm3, 1, %v632_v3  ;;  %v54_v12 = vsel %vm46_vm4, 1, %v632_v3  ;;  %vm47_vm5 = vcmp.gt.f32.partialorder %v39_v11, 0.5  ;;  %vm48_vm6 = vcmp.gt.f32.partialorder %v40_v13, 0.5  ;;  %v258_v19 = vld [vmem:[%s820_s3 + $0x18] sm:$0xff]  ;;  %v257_v21 = vld [vmem:[%s820_s3 + $0x10] sm:$0xff] }
   0x8   :  { %159 = vperm.xlu1 %605, %v51_v6   ;;  %62 = vperm.xlu0 %604, %v51_v6   ;;  %v55_v14 = vsel %vm47_vm5, 1, %v632_v3  ;;  %v56_v16 = vsel %vm48_vm6, 1, %v632_v3  ;;  %vm49_vm7 = vcmp.gt.f32.partialorder %v41_v15, 0.5  ;;  %v254_v20 = vld [vmem:[%s819_s2 + $0x18] sm:$0xff]  ;;  %v253_v22 = vld [vmem:[%s819_s2 + $0x10] sm:$0xff]  ;;  %v256_v23 = vld [vmem:[%s820_s3 + $0x8] sm:$0xff] }
   0x9   :  { %v57_v17 = vsel %vm49_vm7, 1, %v632_v3  ;;  %571 = vmatpush3.msra.mxu0 %v258_v19  ;;  %582 = vmatpush3.msra.mxu1 %v254_v20  ;;  %v252_v24 = vld [vmem:[%s819_s2 + $0x8] sm:$0xff]  ;;  %v255_v25 = vld [vmem:[%s820_s3] sm:$0xff]  ;;  %vm634_vm8 = vmmov 0   ;;  %vm98_vm9 = vcmask 261120   ;;  %v28_v48 = vld [vmem:[%s817_s0 + $0x10] sm:$0xff] }
   0xa   :  { %572 = vmatprep.subr.mxu0 %v633_v18  ;;  %583 = vmatprep.subr.mxu1 %v633_v18  ;;  %v251_v26 = vld [vmem:[%s819_s2] sm:$0xff]  ;;  %v27_v34 = vld [vmem:[%s817_s0 + $0x8] sm:$0xff]  ;;  %v29_v59 = vld [vmem:[%s817_s0 + $0x18] sm:$0xff]  ;;  %vm267_vm4 = vcmask 1041409  }
   0xb   :  { %573 = vmatpush3.msra.mxu0 %v257_v21  ;;  %584 = vmatpush3.msra.mxu1 %v253_v22  ;;  %v26_v27 = vld [vmem:[%s817_s0] sm:$0xff] }
   0xc   :  { %162 = vperm.xlu1 %605, %v52_v8   ;;  %65 = vperm.xlu0 %604, %v52_v8   ;;  %v30_v13 = vld [vmem:[%s817_s0 + $0x20] sm:$0xff] }
   0xd   :  { %574 = vmatprep.subr.mxu0 %v633_v18  ;;  %585 = vmatprep.subr.mxu1 %v633_v18 }
   0xe   :  { %575 = vmatpush3.msra.mxu0 %v256_v23  ;;  %586 = vmatpush3.msra.mxu1 %v252_v24 }
   0xf   :  { %576 = vmatprep.subr.mxu0 %v633_v18  ;;  %587 = vmatprep.subr.mxu1 %v633_v18 }
  0x10   :  { %165 = vperm.xlu1 %605, %v53_v10   ;;  %68 = vperm.xlu0 %604, %v53_v10  }
  0x11   :  { %577 = vmatpush3.msra.mxu0 %v255_v25  ;;  %578 = vmatprep.mubr.msk.f32.mxu0 %vm634_vm8, %v633_v18 }
  0x12   :  { %588 = vmatpush3.msra.mxu1 %v251_v26  ;;  %589 = vmatprep.mubr.msk.f32.mxu1 %vm634_vm8, %v633_v18 }
  0x13   :  { %592 = vmatprep.subr.mxu0 %v633_v18 }
  0x14   :  { %168 = vperm.xlu1 %605, %v54_v12   ;;  %71 = vperm.xlu0 %604, %v54_v12  }
  0x18   :  { %171 = vperm.xlu1 %605, %v55_v14   ;;  %74 = vperm.xlu0 %604, %v55_v14  }
  0x1c   :  { %174 = vperm.xlu1 %605, %v56_v16   ;;  %77 = vperm.xlu0 %604, %v56_v16  }
  0x20   :  { %177 = vperm.xlu1 %605, %v57_v17   ;;  %80 = vperm.xlu0 %604, %v57_v17  }
  0x24   :  { %606 = vset.pattern.permute.xlu0 %v631_v2 }
  0x7f   :  { %v157_v28 = vpop.permute.xlu1 %156  ;;  %v60_v29 = vpop.permute.xlu0 %59 }
  0x80   :  { %vm179_vm10 = vcmp.eq.s32.totalorder %v157_v28, 1  ;;  %vm82_vm11 = vcmp.eq.s32.totalorder %v60_v29, 1 }
  0x81   :  { %v187_v30 = vsel %vm179_vm10, %v26_v27, -1000.0  ;;  %v90_v31 = vsel %vm82_vm11, %v26_v27, -1000.0  ;;  %v31_v27 = vld [vmem:[%s817_s0 + $0x28] sm:$0xff] }
  0x82   :  { %v195_v32 = vsel %vm98_vm9, %v187_v30, -inf  ;;  %v99_v33 = vsel %vm98_vm9, %v90_v31, -inf }
  0x83   :  { %v196_v35 = vrot.slane %v195_v32, 4  ;;  %v100_v36 = vrot.slane %v99_v33, 4  ;;  %v160_v37 = vpop.permute.xlu1 %159  ;;  %v63_v38 = vpop.permute.xlu0 %62 }
  0x84   :  { %vm180_vm12 = vcmp.eq.s32.totalorder %v160_v37, 1  ;;  %vm83_vm13 = vcmp.eq.s32.totalorder %v63_v38, 1 }
  0x85   :  { %v197_v39 = vmax.f32 %v195_v32, %v196_v35  ;;  %v101_v40 = vmax.f32 %v99_v33, %v100_v36  ;;  %v188_v41 = vsel %vm180_vm12, %v27_v34, -1000.0  ;;  %v91_v42 = vsel %vm83_vm13, %v27_v34, -1000.0 }
  0x86   :  { %v202_v43 = vsel %vm98_vm9, %v188_v41, -inf  ;;  %v106_v44 = vsel %vm98_vm9, %v91_v42, -inf  ;;  %vm269_vm13 = vcmask 1042434  }
  0x87   :  { %v203_v45 = vrot.slane %v202_v43, 4  ;;  %v107_v46 = vrot.slane %v106_v44, 4  ;;  %v163_v47 = vpop.permute.xlu1 %162  ;;  %v66_v49 = vpop.permute.xlu0 %65  ;;  %v198_v50 = vrot.slane %v197_v39, 2  ;;  %v102_v51 = vrot.slane %v101_v40, 2 }
  0x88   :  { %vm181_vm14 = vcmp.eq.s32.totalorder %v163_v47, 1  ;;  %vm84_vm15 = vcmp.eq.s32.totalorder %v66_v49, 1 }
  0x89   :  { %v204_v52 = vmax.f32 %v202_v43, %v203_v45  ;;  %v108_v53 = vmax.f32 %v106_v44, %v107_v46  ;;  %v189_v54 = vsel %vm181_vm14, %v28_v48, -1000.0  ;;  %v92_v55 = vsel %vm84_vm15, %v28_v48, -1000.0 }
  0x8a   :  { %v199_v61 = vmax.f32 %v197_v39, %v198_v50  ;;  %v103_v62 = vmax.f32 %v101_v40, %v102_v51  ;;  %v209_v63 = vsel %vm98_vm9, %v189_v54, -inf  ;;  %v113_v0 = vsel %vm98_vm9, %v92_v55, -inf  ;;  %v32_v54 = vld [vmem:[%s817_s0 + $0x30] sm:$0xff] }
  0x8b   :  { %v205_v56 = vrot.slane %v204_v52, 2  ;;  %v109_v57 = vrot.slane %v108_v53, 2  ;;  %v166_v58 = vpop.permute.xlu1 %165  ;;  %v69_v60 = vpop.permute.xlu0 %68  ;;  %v210_v9 = vrot.slane %v209_v63, 4  ;;  %v114_v10 = vrot.slane %v113_v0, 4 }
  0x8c   :  { %vm182_vm0 = vcmp.eq.s32.totalorder %v166_v58, 1  ;;  %vm85_vm1 = vcmp.eq.s32.totalorder %v69_v60, 1  ;;  %v200_v14 = vrot.slane %v199_v61, 1  ;;  %v104_v15 = vrot.slane %v103_v62, 1 }
  0x8d   :  { %v206_v1 = vmax.f32 %v204_v52, %v205_v56  ;;  %v110_v2 = vmax.f32 %v108_v53, %v109_v57  ;;  %v190_v3 = vsel %vm182_vm0, %v29_v59, -1000.0  ;;  %v93_v4 = vsel %vm85_vm1, %v29_v59, -1000.0 }
  0x8e   :  { %v216_v5 = vsel %vm98_vm9, %v190_v3, -inf  ;;  %v120_v6 = vsel %vm98_vm9, %v93_v4, -inf  ;;  %v211_v23 = vmax.f32 %v209_v63, %v210_v9  ;;  %v115_v24 = vmax.f32 %v113_v0, %v114_v10  ;;  %v33_v63 = vld [vmem:[%s817_s0 + $0x38] sm:$0xff] }
  0x8f   :  { %v169_v7 = vpop.permute.xlu1 %168  ;;  %v72_v8 = vpop.permute.xlu0 %71  ;;  %v217_v11 = vrot.slane %v216_v5, 4  ;;  %v121_v12 = vrot.slane %v120_v6, 4  ;;  %v207_v16 = vrot.slane %v206_v1, 1  ;;  %v111_v17 = vrot.slane %v110_v2, 1 }
  0x90   :  { %vm183_vm2 = vcmp.eq.s32.totalorder %v169_v7, 1  ;;  %vm86_vm3 = vcmp.eq.s32.totalorder %v72_v8, 1  ;;  %v201_v30 = vmax.f32 %v199_v61, %v200_v14  ;;  %v105_v31 = vmax.f32 %v103_v62, %v104_v15 }
  0x91   :  { %v191_v19 = vsel %vm183_vm2, %v30_v13, -1000.0  ;;  %v94_v20 = vsel %vm86_vm3, %v30_v13, -1000.0  ;;  %v218_v25 = vmax.f32 %v216_v5, %v217_v11  ;;  %v122_v26 = vmax.f32 %v120_v6, %v121_v12 }
  0x92   :  { %v223_v28 = vsel %vm98_vm9, %v191_v19, -inf  ;;  %v127_v29 = vsel %vm98_vm9, %v94_v20, -inf  ;;  %v208_v32 = vmax.f32 %v206_v1, %v207_v16  ;;  %v112_v33 = vmax.f32 %v110_v2, %v111_v17 }
  0x93   :  { %v172_v21 = vpop.permute.xlu1 %171  ;;  %v75_v22 = vpop.permute.xlu0 %74  ;;  %v224_v34 = vrot.slane %v223_v28, 4  ;;  %v128_v35 = vrot.slane %v127_v29, 4  ;;  %v212_v40 = vrot.slane %v211_v23, 2  ;;  %v116_v41 = vrot.slane %v115_v24, 2 }
  0x94   :  { %vm184_vm5 = vcmp.eq.s32.totalorder %v172_v21, 1  ;;  %vm87_vm6 = vcmp.eq.s32.totalorder %v75_v22, 1  ;;  %v219_v42 = vrot.slane %v218_v25, 2  ;;  %v123_v43 = vrot.slane %v122_v26, 2 }
  0x95   :  { %v192_v36 = vsel %vm184_vm5, %v31_v27, -1000.0  ;;  %v95_v37 = vsel %vm87_vm6, %v31_v27, -1000.0  ;;  %v225_v44 = vmax.f32 %v223_v28, %v224_v34  ;;  %v129_v45 = vmax.f32 %v127_v29, %v128_v35 }
  0x96   :  { %v230_v46 = vsel %vm98_vm9, %v192_v36, -inf  ;;  %v134_v47 = vsel %vm98_vm9, %v95_v37, -inf  ;;  %v768_v48 = vsel %vm267_vm4, %v208_v32, %v201_v30  ;;  %v771_v49 = vsel %vm267_vm4, %v112_v33, %v105_v31 }
  0x97   :  { %v175_v38 = vpop.permute.xlu1 %174  ;;  %v78_v39 = vpop.permute.xlu0 %77  ;;  %v226_v50 = vrot.slane %v225_v44, 2  ;;  %v130_v51 = vrot.slane %v129_v45, 2  ;;  %v231_v52 = vrot.slane %v230_v46, 4  ;;  %v135_v53 = vrot.slane %v134_v47, 4 }
  0x98   :  { %v213_v57 = vmax.f32 %v211_v23, %v212_v40  ;;  %v117_v58 = vmax.f32 %v115_v24, %v116_v41  ;;  %vm185_vm7 = vcmp.eq.s32.totalorder %v175_v38, 1  ;;  %vm88_vm10 = vcmp.eq.s32.totalorder %v78_v39, 1 }
  0x99   :  { %v220_v59 = vmax.f32 %v218_v25, %v219_v42  ;;  %v124_v60 = vmax.f32 %v122_v26, %v123_v43  ;;  %v232_v61 = vmax.f32 %v230_v46, %v231_v52  ;;  %v136_v62 = vmax.f32 %v134_v47, %v135_v53 }
  0x9a   :  { %v193_v0 = vsel %vm185_vm7, %v32_v54, -1000.0  ;;  %v96_v1 = vsel %vm88_vm10, %v32_v54, -1000.0  ;;  %v227_v2 = vmax.f32 %v225_v44, %v226_v50  ;;  %v131_v3 = vmax.f32 %v129_v45, %v130_v51 }
  0x9b   :  { %v178_v55 = vpop.permute.xlu1 %177  ;;  %v81_v56 = vpop.permute.xlu0 %80  ;;  %v233_v4 = vrot.slane %v232_v61, 2  ;;  %v137_v5 = vrot.slane %v136_v62, 2  ;;  %vm271_vm14 = vcmask 1043459   ;;  %v237_v6 = vsel %vm98_vm9, %v193_v0, -inf }
  0x9c   :  { %vm186_vm11 = vcmp.eq.s32.totalorder %v178_v55, 1  ;;  %vm89_vm12 = vcmp.eq.s32.totalorder %v81_v56, 1  ;;  %v141_v7 = vsel %vm98_vm9, %v96_v1, -inf  ;;  %v214_v10 = vrot.slane %v213_v57, 1 }
  0x9d   :  { %v194_v8 = vsel %vm186_vm11, %v33_v63, -1000.0  ;;  %v97_v9 = vsel %vm89_vm12, %v33_v63, -1000.0  ;;  %v118_v11 = vrot.slane %v117_v58, 1  ;;  %v234_v12 = vmax.f32 %v232_v61, %v233_v4 }
  0x9e   :  { %v138_v13 = vmax.f32 %v136_v62, %v137_v5  ;;  %vm273_vm15 = vcmask 1044484   ;;  %v238_v14 = vrot.slane %v237_v6, 4  ;;  %v142_v15 = vrot.slane %v141_v7, 4  ;;  %v555_v5 = vld [vmem:[%s821_s4] ss:$0 sm:$0xff]  ;;  %s635_s4 = smov [#allocation2]  }
  0x9f   :  { %v244_v16 = vsel %vm98_vm9, %v194_v8, -inf  ;;  %v148_v17 = vsel %vm98_vm9, %v97_v9, -inf  ;;  %vm275_vm0 = vcmask 1045509   ;;  %v221_v19 = vrot.slane %v220_v59, 1  ;;  %s543_s27 = sshll.u32 %s635_s4, 4  ;;  %s544_s27 = int_to_ptr.vmem [resolvable:$true] %s543_s27 }
  0xa0   :  { %v125_v20 = vrot.slane %v124_v60, 1  ;;  %v245_v21 = vrot.slane %v244_v16, 4  ;;  %v149_v22 = vrot.slane %v148_v17, 4  ;;  %vm277_vm1 = vcmask 1046534   ;;  %s609_s28 = scalar_lea.vmem %s544_s27, 128  ;;  %p614_p1 = scmp.lt.s32.totalorder %s544_s27, %s544_s27 }
  0xa1   :  { %v228_v23 = vrot.slane %v227_v2, 1  ;;  %v132_v24 = vrot.slane %v131_v3, 1  ;;  %v239_v25 = vmax.f32 %v237_v6, %v238_v14  ;;  %v143_v26 = vmax.f32 %v141_v7, %v142_v15  ;;  %v458_v14 = vld [vmem:[%s822_s5] sm:$0xff]  ;;  %p610_p0 = scmp.ne.s32.totalorder %s544_s27, %s609_s28  ;;  %p615_p2 = scmp.lt.s32.totalorder %s609_s28, %s609_s28 }
  0xa2   :  { %vm279_vm2 = vcmask 1047559   ;;  %v235_v27 = vrot.slane %v234_v12, 1  ;;  %v139_v28 = vrot.slane %v138_v13, 1  ;;  %v246_v29 = vmax.f32 %v244_v16, %v245_v21 }
  0xa3   :  { %v150_v30 = vmax.f32 %v148_v17, %v149_v22  ;;  %v215_v31 = vmax.f32 %v213_v57, %v214_v10  ;;  %v119_v32 = vmax.f32 %v117_v58, %v118_v11  ;;  %v240_v33 = vrot.slane %v239_v25, 2  ;;  %p616_p3 = por %p615_p2, %p614_p1 }
  0xa4   :  { %v144_v34 = vrot.slane %v143_v26, 2  ;;  %v222_v35 = vmax.f32 %v220_v59, %v221_v19  ;;  %v126_v36 = vmax.f32 %v124_v60, %v125_v20  ;;  %v247_v37 = vrot.slane %v246_v29, 2 }
  0xa5   :  { %v151_v38 = vrot.slane %v150_v30, 2  ;;  %v229_v39 = vmax.f32 %v227_v2, %v228_v23  ;;  %v133_v40 = vmax.f32 %v131_v3, %v132_v24  ;;  %v241_v41 = vmax.f32 %v239_v25, %v240_v33  ;;  %p617_p4 = pnand %p616_p3, %p610_p0 }
  0xa6   :  { %v145_v42 = vmax.f32 %v143_v26, %v144_v34  ;;  %v236_v43 = vmax.f32 %v234_v12, %v235_v27  ;;  %v140_v44 = vmax.f32 %v138_v13, %v139_v28  ;;  %v248_v45 = vmax.f32 %v246_v29, %v247_v37  ;;  %v459_v13 = vld [vmem:[%s822_s5 + $0x8] sm:$0xff] }
  0xa7   :  { %v152_v46 = vmax.f32 %v150_v30, %v151_v38  ;;  %v270_v47 = vsel %vm269_vm13, %v215_v31, %v768_v48  ;;  %v362_v50 = vsel %vm269_vm13, %v119_v32, %v771_v49  ;;  %v242_v51 = vrot.slane %v241_v41, 1 }
  0xa8   :  { %v146_v52 = vrot.slane %v145_v42, 1  ;;  %v272_v53 = vsel %vm271_vm14, %v222_v35, %v270_v47  ;;  %v363_v54 = vsel %vm271_vm14, %v126_v36, %v362_v50  ;;  %v249_v55 = vrot.slane %v248_v45, 1 }
  0xa9   :  { %v153_v56 = vrot.slane %v152_v46, 1  ;;  %v243_v57 = vmax.f32 %v241_v41, %v242_v51  ;;  %v274_v59 = vsel %vm273_vm15, %v229_v39, %v272_v53  ;;  %v364_v60 = vsel %vm273_vm15, %v133_v40, %v363_v54 }
  0xaa   :  { %v147_v58 = vmax.f32 %v145_v42, %v146_v52  ;;  %v250_v61 = vmax.f32 %v248_v45, %v249_v55  ;;  %v276_v48 = vsel %vm275_vm0, %v236_v43, %v274_v59  ;;  %v365_v49 = vsel %vm275_vm0, %v140_v44, %v364_v60 }
  0xab   :  { %v154_v62 = vmax.f32 %v152_v46, %v153_v56  ;;  %v278_v63 = vsel %vm277_vm1, %v243_v57, %v276_v48  ;;  %vm450_vm3 = vcmask 130048  }
  0xac   :  { %v366_v0 = vsel %vm277_vm1, %v147_v58, %v365_v49  ;;  %v280_v1 = vsel %vm279_vm2, %v250_v61, %v278_v63 }
  0xad   :  { %v367_v2 = vsel %vm279_vm2, %v154_v62, %v366_v0  ;;  %579 = vmatmul.mubr.msk.f32.vlgmr.msra.gmra.mxu0 %vm98_vm9, %v280_v1 }
  0xae   :  { %590 = vmatmul.mubr.msk.f32.vlgmr.msra.gmra.mxu1 %vm98_vm9, %v367_v2  ;;  %596 = vmatprep.mubr.msk.f32.mxu0 %vm634_vm8, %v633_v18 }
  0xaf   :  { %593 = vmatpush3.msra.mxu0 %v459_v13 }
  0xb0   :  { %594 = vmatprep.subr.mxu0 %v633_v18 }
  0xb1   :  { %595 = vmatpush3.msra.mxu0 %v458_v14 }
 0x16d   :  { %v349_v3 = vpop.f32.mrf.mxu0 }
 0x16e   :  { %v436_v4 = vpop.f32.mrf.mxu1 }
 0x16f   :  { %v437_v6 = vadd.f32 %v436_v4, %v349_v3  ;;  %v580_v7 = vpop.f32.mrf.mxu0 }
 0x170   :  { %v591_v8 = vpop.f32.mrf.mxu1 }
 0x171   :  { %v447_v9 = vadd.f32 %v555_v5, %v437_v6 }
 0x173   :  { %v448_v10 = vmax.f32 %v447_v9, 0.0 }
 0x175   :  { %v449_v11 = vmul.f32 %v448_v10, %v448_v10 }
 0x177   :  { %v451_v12 = vsel %vm450_vm3, %v449_v11, 0.0 }
 0x178   :  { %452 = vadd.xlane.f32.xlu0 %v451_v12 }
 0x201   :  { %v453_v15 = vpop.xlane.xlu0 %452 }
 0x202   :  { %v454_v16 = vadd.f32 1e-12, %v453_v15 }
 0x204   :  { %607 = vrsqrt.f32 %v454_v16 }
 0x211   :  { %v608_v17 = vpop.eup %607 }
 0x212   :  { %v456_v19 = vmul.f32 %v608_v17, %v448_v10 }
 0x214   :  { %597 = vmatmul.mubr.msk.f32.vlgmr.msra.gmra.mxu0 %vm450_vm3, %v456_v19  ;;  %457 = vst.msk [vmem:[#allocation2] sm:$0xff] %vm450_vm3, %v456_v19 }
 0x215   :  { %620 = shalt.err (!%p617_p4)
}
 0x216   :  { %546 = dma.vmem_to_hbm [thread:$0]  %s544_s27, 128, %s824_s7, [#allocation3]   ;;  %vm533_vm8 = vcmask 31744  }
 0x2d4   :  { %v529_v18 = vpop.f32.mrf.mxu0 }
 0x2d5   :  { %534 = vst.msk [vmem:[%s823_s6] sm:$0xff] %vm533_vm8, %v529_v18 }
 0x2d6   :  { %v598_v20 = vpop.f32.mrf.mxu0 }
 0x2d7   :  { %629 = dma.done.wait [#allocation3], 128  }
 0x2d8   :  { %630 = vsyncadd [#allocation3], 4294967168 }
 0x2d9   :  { %552 = vsyncpa [#allocation3], 1 }

</bundles_post_ra>
